<compile_context>
chip_gen: v6e
topology: v6e:2x2x1
jax: 0.10.0
libtpu: 0.0.40
codegen_flags: <defaults>
</compile_context>

<pallas_src>
import functools

import jax
import jax.numpy as jnp
import numpy as np
from jax import lax
from jax.experimental import pallas as pl
from jax.experimental.pallas import tpu as pltpu


def _round_up(value, multiple):
    return ((value + multiple - 1) // multiple) * multiple


def _next_pow2(n):
    return 1 if n <= 1 else 1 << (n - 1).bit_length()


def _suffix_products(t, num_stages):
    """Suffix products down the sublane axis via an unmasked doubling scan.

    t: [SPAD, TB] with t == 1.0 for every padded row (row >= num_stages).
    Result row j = prod_{l >= j} t[l] exactly for all rows
    j <= SPAD - next_pow2(num_stages); the wrapper guarantees
    SPAD >= num_stages + next_pow2(num_stages), so rows 0..num_stages
    (including the bias row) are exact.  Higher rows may contain wrap
    garbage but always carry zero arbiter weight.
    """
    spad = t.shape[0]
    fvm = t
    off = 1
    while off < num_stages:
        # rolled[j] = fvm[(j + off) % spad]  (sublane rotate -> XLU slot)
        fvm = fvm * pltpu.roll(fvm, spad - off, axis=0)
        off *= 2
    return fvm


def _sigmoid(z):
    # exp goes to the EUP; exact reciprocal keeps bit-accuracy vs the reference.
    # TODO(synk): approx=True is a small VALU win on v6e, needs tolerance re-check.
    return pl.reciprocal(1.0 + jnp.exp(-z), approx=False)


def _xor_of_rows(raw, k):
    """XOR-arbiter == product of the first k rows of raw [Kpad, TB] -> [1, TB]."""
    prod = raw[0:1, :]
    for i in range(1, k):
        prod = prod * raw[i:i + 1, :]
    return prod


def _x_phase_kernel(x_ref, wxt_ref, inv_ref, *, num_stages, kx):
    t = 1.0 - 2.0 * x_ref[...].astype(jnp.float32)        # [SPAD, TB], int8 -> f32
    fvm = _suffix_products(t, num_stages)                  # [SPAD, TB]
    # Arbiter contraction on the MXU; bias folded into column `num_stages`
    # where the suffix product is exactly 1.
    raw = jnp.dot(wxt_ref[...], fvm,
                  preferred_element_type=jnp.float32,
                  precision=lax.Precision.HIGHEST)         # [KXP, TB]
    sig = _sigmoid(_xor_of_rows(raw, kx))                  # [1, TB]
    inv_ref[...] = 1.0 - 2.0 * sig                         # lane-dense store


def _y_phase_kernel(piv_ref, stats_ref, x_ref, wyt_ref, inv_ref, out_ref, *,
                    num_stages, ky):
    piv = piv_ref[0]                                       # dynamic y_pivot (SMEM)
    mean = stats_ref[0]                                    # full-batch BN stats
    rstd = stats_ref[1]

    t = 1.0 - 2.0 * x_ref[...].astype(jnp.float32)         # [SPAD, TB]
    fvm = _suffix_products(t, num_stages)
    fvm_shift = pltpu.roll(fvm, 1, axis=0)                 # fvm_shift[j] = fvm[j-1]

    inv_bn = (inv_ref[...] - mean) * rstd                  # fused BatchNorm, [1, TB]
    abs_inv = jnp.abs(inv_bn)

    row = lax.broadcasted_iota(jnp.int32, fvm.shape, 0)
    # rows 0..piv   : fvm[r]   * inv_bn
    # rows piv+1..S : fvm[r-1] * |inv_bn|
    # rows >= S+1   : |inv_bn|   (rows >= S+2 carry zero weight)
    y_fvm = jnp.where(
        row <= piv,
        fvm * inv_bn,
        jnp.where(row <= num_stages, fvm_shift * abs_inv, abs_inv),
    )
    raw = jnp.dot(wyt_ref[...], y_fvm,
                  preferred_element_type=jnp.float32,
                  precision=lax.Precision.HIGHEST)         # [KYP, TB]
    out_ref[...] = _sigmoid(_xor_of_rows(raw, ky))


def interpose_puf_forward(x, wx, bx, wy, y_pivot, *, batch_tile=2048):
    """x: [B, S] challenge bits; wx: [S, Kx]; bx: [Kx]; wy: [S+2, Ky] -> sigmoid [B]."""
    b, s = x.shape
    sp = s + 2
    kx = wx.shape[1]
    ky = wy.shape[1]

    # Stage axis on SUBLANES: pad so (a) y rows 0..s+1 exist, (b) the unmasked
    # doubling scan never wraps for rows 0..s, (c) int8 sublane tiling (32).
    spad = _round_up(max(sp, s + _next_pow2(s)), 32)
    kxp = _round_up(kx, 8)
    kyp = _round_up(ky, 8)

    # Batch axis on LANES: tile is a multiple of 128.
    tb = max(128, min(_round_up(batch_tile, 128), _round_up(b, 128)))
    bp = _round_up(b, tb)
    if bp // tb == 1 and b > 128:
        # v7x megacore: keep >= 2 grid steps so both TensorCores get work.
        tb = _round_up((b + 1) // 2, 128)
        bp = _round_up(b, tb)
    grid = (bp // tb,)

    # Challenges stay int8 in HBM as [SPAD, Bpad]; padded rows/columns are 0,
    # which gives t = 1 there (suffix products unaffected).
    x_i8 = jnp.zeros((spad, bp), jnp.int8).at[:s, :b].set(x.astype(jnp.int8).T)

    # Arbiter weights as [Kpad, SPAD]; x bias folded into column s (fvm == 1).
    wxt = jnp.zeros((kxp, spad), jnp.float32)
    wxt = wxt.at[:kx, :s].set(wx.astype(jnp.float32).T)
    wxt = wxt.at[:kx, s].set(bx.astype(jnp.float32))
    wyt = jnp.zeros((kyp, spad), jnp.float32)
    wyt = wyt.at[:ky, :sp].set(wy.astype(jnp.float32).T)

    # ---- pass 1: x XOR-arbiter -> inverted sigmoid, lane-dense [1, Bpad] ----
    inv_row = pl.pallas_call(
        functools.partial(_x_phase_kernel, num_stages=s, kx=kx),
        out_shape=jax.ShapeDtypeStruct((1, bp), jnp.float32),
        grid_spec=pltpu.PrefetchScalarGridSpec(
            num_scalar_prefetch=0,
            grid=grid,
            in_specs=[
                pl.BlockSpec((spad, tb), lambda i: (0, i)),
                pl.BlockSpec((kxp, spad), lambda i: (0, 0)),
            ],
            out_specs=pl.BlockSpec((1, tb), lambda i: (0, i)),
        ),
        compiler_params=pltpu.CompilerParams(dimension_semantics=("parallel",)),
    )(x_i8, wxt)

    # ---- BatchNorm1d(1), training mode: statistics over the FULL real batch --
    # (per-tile statistics would change the result, so this tiny O(B) reduction
    #  lives in the wrapper between the two passes.)
    inv_valid = inv_row[0, :b]
    mean = jnp.mean(inv_valid)
    var = jnp.mean(jnp.square(inv_valid - mean))
    rstd = lax.rsqrt(var + 1e-5)
    stats = jnp.stack([mean, rstd]).astype(jnp.float32)
    piv = jnp.asarray([y_pivot], dtype=jnp.int32)          # dynamic -> no recompile

    # ---- pass 2: y features + y XOR-arbiter + sigmoid (BN fused in-kernel) ---
    out = pl.pallas_call(
        functools.partial(_y_phase_kernel, num_stages=s, ky=ky),
        out_shape=jax.ShapeDtypeStruct((1, bp), jnp.float32),
        grid_spec=pltpu.PrefetchScalarGridSpec(
            num_scalar_prefetch=2,
            grid=grid,
            in_specs=[
                pl.BlockSpec((spad, tb), lambda i, piv_r, st_r: (0, i)),
                pl.BlockSpec((kyp, spad), lambda i, piv_r, st_r: (0, 0)),
                pl.BlockSpec((1, tb), lambda i, piv_r, st_r: (0, i)),
            ],
            out_specs=pl.BlockSpec((1, tb), lambda i, piv_r, st_r: (0, i)),
        ),
        compiler_params=pltpu.CompilerParams(dimension_semantics=("parallel",)),
    )(piv, stats, x_i8, wyt, inv_row)

    return out[0, :b]


def reference_forward(x, wx, bx, wy, y_pivot):
    """Pure-JAX mirror of InterposePufNet.forward (output_type='sigmoid',
    BatchNorm1d in training mode with default affine params).  Contractions
    are explicit f32 sums so the reference is full-precision."""
    B, S = x.shape
    t = 1.0 - 2.0 * x
    fvm = jnp.stack([jnp.prod(t[:, i:], axis=-1) for i in range(S)], axis=1)
    raw_x = jnp.sum(fvm[:, :, None] * wx[None, :, :], axis=1) + bx[None, :]
    raw_x_out = jnp.prod(raw_x, axis=-1)
    sig = 1.0 / (1.0 + jnp.exp(-raw_x_out))
    inv = 1.0 - 2.0 * sig
    mean = jnp.mean(inv)
    var = jnp.mean((inv - mean) ** 2)
    inv = (inv - mean) / jnp.sqrt(var + 1e-5)
    abs_inv = jnp.abs(inv)
    y_fvm = jnp.zeros((B, S + 2), dtype=x.dtype)
    y_fvm = y_fvm.at[:, y_pivot + 1:-1].set(fvm[:, y_pivot:] * abs_inv[:, None])
    y_fvm = y_fvm.at[:, y_pivot].set(inv * fvm[:, y_pivot])
    y_fvm = y_fvm.at[:, :y_pivot].set(fvm[:, :y_pivot] * inv[:, None])
    y_fvm = y_fvm.at[:, -1].set(abs_inv)
    raw_y = jnp.sum(y_fvm[:, :, None] * wy[None, :, :], axis=1)
    raw_y_out = jnp.prod(raw_y, axis=-1)
    return 1.0 / (1.0 + jnp.exp(-raw_y_out))


if __name__ == "__main__":
    # Shapes consistent with the module: num_stages=16, num_x_xors=num_y_xors=3,
    # y_pivot=8.  BatchNorm is in training mode (fresh module defaults).
    B, S, KX, KY, Y_PIVOT = 8, 16, 3, 3, 8

    key = jax.random.PRNGKey(0)
    k_x, k_wx, k_bx, k_wy, k_x2 = jax.random.split(key, 5)

    # Challenge bits in {0, 1}.
    x = jax.random.bernoulli(k_x, 0.5, (B, S)).astype(jnp.float32)
    wx = 0.5 * jax.random.normal(k_wx, (S, KX), dtype=jnp.float32)
    bx = 0.5 * jax.random.normal(k_bx, (KX,), dtype=jnp.float32)
    wy = 0.5 * jax.random.normal(k_wy, (S + 2, KY), dtype=jnp.float32)

    out = jax.block_until_ready(interpose_puf_forward(x, wx, bx, wy, Y_PIVOT))
    ref = reference_forward(x, wx, bx, wy, Y_PIVOT)
    np.testing.assert_allclose(np.asarray(out), np.asarray(ref), rtol=1e-4, atol=1e-5)

    # Second case: batch larger than one 128-lane tile -> multi-tile grid,
    # padded batch columns, and full-batch BatchNorm statistics across tiles.
    B2 = 200
    x2 = jax.random.bernoulli(k_x2, 0.5, (B2, S)).astype(jnp.float32)
    out2 = jax.block_until_ready(
        interpose_puf_forward(x2, wx, bx, wy, Y_PIVOT, batch_tile=128)
    )
    ref2 = reference_forward(x2, wx, bx, wy, Y_PIVOT)
    np.testing.assert_allclose(np.asarray(out2), np.asarray(ref2), rtol=1e-4, atol=1e-5)

    print("KERNEL_OK")
</pallas_src>

<mosaic_0001>
module attributes {stable_mosaic.version = 11 : i64} {
  func.func @_x_phase_kernel(%arg0: i32, %arg1: memref<32x128xi8, #tpu.memory_space<vmem>>, %arg2: memref<8x32xf32, #tpu.memory_space<vmem>>, %arg3: memref<1x128xf32, #tpu.memory_space<vmem>>) attributes {dimension_semantics = [#tpu.dimension_semantics<parallel>], iteration_bounds = array<i64: 1>, scalar_prefetch = 0 : i64, scratch_operands = 0 : i64, tpu.core_type = #tpu.core_type<tc>, window_params = [{transform_indices = @transform_0, window_bounds = array<i64: 32, 128>}, {pipeline_mode = #tpu.pipeline_mode<synchronous>, transform_indices = @transform_1, window_bounds = array<i64: 8, 32>}, {transform_indices = @transform_2, window_bounds = array<i64: 1, 128>}]} {
    %c0 = arith.constant 0 : index
    %c0_0 = arith.constant 0 : index
    %0 = vector.load %arg1[%c0, %c0_0] : memref<32x128xi8, #tpu.memory_space<vmem>>, vector<32x128xi8>
    %1 = arith.sitofp %0 : vector<32x128xi8> to vector<32x128xf32>
    %cst = arith.constant 2.000000e+00 : f32
    %2 = vector.broadcast %cst : f32 to vector<32x128xf32>
    %3 = arith.mulf %2, %1 : vector<32x128xf32>
    %cst_1 = arith.constant 1.000000e+00 : f32
    %4 = vector.broadcast %cst_1 : f32 to vector<32x128xf32>
    %5 = arith.subf %4, %3 : vector<32x128xf32>
    %c31_i32 = arith.constant 31 : i32
    %6 = tpu.dynamic_rotate %5 by %c31_i32 dim 0 : vector<32x128xf32>, i32 -> vector<32x128xf32>
    %7 = arith.mulf %5, %6 : vector<32x128xf32>
    %c30_i32 = arith.constant 30 : i32
    %8 = tpu.dynamic_rotate %7 by %c30_i32 dim 0 : vector<32x128xf32>, i32 -> vector<32x128xf32>
    %9 = arith.mulf %7, %8 : vector<32x128xf32>
    %c28_i32 = arith.constant 28 : i32
    %10 = tpu.dynamic_rotate %9 by %c28_i32 dim 0 : vector<32x128xf32>, i32 -> vector<32x128xf32>
    %11 = arith.mulf %9, %10 : vector<32x128xf32>
    %c24_i32 = arith.constant 24 : i32
    %12 = tpu.dynamic_rotate %11 by %c24_i32 dim 0 : vector<32x128xf32>, i32 -> vector<32x128xf32>
    %13 = arith.mulf %11, %12 : vector<32x128xf32>
    %c0_2 = arith.constant 0 : index
    %c0_3 = arith.constant 0 : index
    %14 = vector.load %arg2[%c0_2, %c0_3] : memref<8x32xf32, #tpu.memory_space<vmem>>, vector<8x32xf32>
    %cst_4 = arith.constant dense<0.000000e+00> : vector<8x128xf32>
    %15 = tpu.matmul %14, %13, %cst_4 {dimension_numbers = #tpu.dot_dimension_numbers<[1], [0], [0], [1], [0, 0, 1, 1], [], []>, precision = #tpu.contract_precision<fp32>} : vector<8x32xf32>, vector<32x128xf32>, vector<8x128xf32> -> vector<8x128xf32>
    %16 = vector.extract_strided_slice %15 {offsets = [0, 0], sizes = [1, 128], strides = [1, 1]} : vector<8x128xf32> to vector<1x128xf32>
    %17 = vector.extract_strided_slice %15 {offsets = [1, 0], sizes = [1, 128], strides = [1, 1]} : vector<8x128xf32> to vector<1x128xf32>
    %18 = arith.mulf %16, %17 : vector<1x128xf32>
    %19 = vector.extract_strided_slice %15 {offsets = [2, 0], sizes = [1, 128], strides = [1, 1]} : vector<8x128xf32> to vector<1x128xf32>
    %20 = arith.mulf %18, %19 : vector<1x128xf32>
    %cst_5 = arith.constant 0.000000e+00 : f32
    %21 = vector.broadcast %cst_5 : f32 to vector<1x128xf32>
    %22 = arith.subf %21, %20 : vector<1x128xf32>
    %23 = math.exp %22 : vector<1x128xf32>
    %cst_6 = arith.constant 1.000000e+00 : f32
    %24 = vector.broadcast %cst_6 : f32 to vector<1x128xf32>
    %25 = arith.addf %24, %23 : vector<1x128xf32>
    %26 = tpu.reciprocal %25 : vector<1x128xf32> -> vector<1x128xf32>
    %cst_7 = arith.constant 2.000000e+00 : f32
    %27 = vector.broadcast %cst_7 : f32 to vector<1x128xf32>
    %28 = arith.mulf %27, %26 : vector<1x128xf32>
    %cst_8 = arith.constant 1.000000e+00 : f32
    %29 = vector.broadcast %cst_8 : f32 to vector<1x128xf32>
    %30 = arith.subf %29, %28 : vector<1x128xf32>
    %c0_9 = arith.constant 0 : index
    %c0_10 = arith.constant 0 : index
    %31 = vector.load %arg3[%c0_9, %c0_10] : memref<1x128xf32, #tpu.memory_space<vmem>>, vector<1x128xf32>
    tpu.vector_store %arg3[%c0_9, %c0_10], %30 {strides = array<i32>} : memref<1x128xf32, #tpu.memory_space<vmem>>, vector<1x128xf32>,
    return
  }
  func.func @transform_0(%arg0: i32) -> (i32, i32) {
    %c0_i32 = arith.constant 0 : i32
    %c0_i32_0 = arith.constant 0 : i32
    return %c0_i32, %arg0 : i32, i32
  }
  func.func @transform_1(%arg0: i32) -> (i32, i32) {
    %c0_i32 = arith.constant 0 : i32
    %c0_i32_0 = arith.constant 0 : i32
    %c0_i32_1 = arith.constant 0 : i32
    return %c0_i32, %c0_i32_0 : i32, i32
  }
  func.func @transform_2(%arg0: i32) -> (i32, i32) {
    %c0_i32 = arith.constant 0 : i32
    %c0_i32_0 = arith.constant 0 : i32
    return %c0_i32, %arg0 : i32, i32
  }
}

</mosaic_0001>

<bundles_post_ra>
// kernel: tpu_custom_call.1
= control target key start
LH: loop header
LB: loop body
LE: loop exit
PB: predicated region body
PF: predicated region fallthrough
CT: control target
= control target key end

     0   :  { %7 = vsyncpa [#allocation3], 0  ;;  %s894_s0 = inlined_call_operand.hbm [shape: s8[32,128], index: 0, kind: input, shape index: {}]   ;;  %s895_s1 = inlined_call_operand.hbm [shape: f32[8,32], index: 1, kind: input, shape index: {}]   ;;  %s896_s2 = inlined_call_operand.hbm [shape: f32[1,128], index: 2, kind: output, shape index: {}]  }
   0x1   :  { %8 = vsyncpa [#allocation6], 0 }
   0x2   :  { %9 = vsyncpa [#allocation4], 0  ;;  %s790_s9 = smov [#allocation2]   ;;  %s791_s11 = smov [#allocation5]  }
   0x3   :  { %s16_s10 = sshll.u32 %s790_s9, 4  ;;  %s26_s12 = sshll.u32 %s791_s11, 4  ;;  %s17_s10 = int_to_ptr.vmem [resolvable:$true] %s16_s10  ;;  %s27_s12 = int_to_ptr.vmem [resolvable:$true] %s26_s12 }
   0x4   :  { %s732_s13 = scalar_lea.vmem %s17_s10, 128  ;;  %p737_p1 = scmp.lt.s32.totalorder %s17_s10, %s17_s10 }
   0x5   :  { %p733_p0 = scmp.ne.s32.totalorder %s17_s10, %s732_s13  ;;  %p738_p2 = scmp.lt.s32.totalorder %s732_s13, %s732_s13 }
   0x7   :  { %p739_p3 = por %p738_p2, %p737_p1 }
   0x9   :  { %p740_p4 = pnand %p739_p3, %p733_p0 }
   0xb   :  { %743 = shalt.err (!%p740_p4)
}
   0xc   :  { %19 = dma.hbm_to_vmem [thread:$0]  %s894_s0, 128, %s17_s10, [#allocation3]  }
   0xd   :  { %s752_s16 = scalar_lea.vmem %s27_s12, 128  ;;  %p757_p6 = scmp.lt.s32.totalorder %s27_s12, %s27_s12 }
   0xe   :  { %p753_p5 = scmp.ne.s32.totalorder %s27_s12, %s752_s16  ;;  %p758_p7 = scmp.lt.s32.totalorder %s752_s16, %s752_s16 }
  0x10   :  { %p759_p8 = por %p758_p7, %p757_p6 }
  0x12   :  { %p760_p9 = pnand %p759_p8, %p753_p5 }
  0x14   :  { %763 = shalt.err (!%p760_p9)
}
  0x15   :  { %29 = dma.hbm_to_vmem [thread:$0]  %s895_s1, 128, %s27_s12, [#allocation6]  }
  0x16   :  { %784 = dma.done.wait [#allocation3], 128  }
  0x17   :  { %785 = vsyncadd [#allocation3], 4294967168 }
  0x18   :  { %786 = dma.done.wait [#allocation6], 128  }
  0x19   :  { %787 = vsyncadd [#allocation6], 4294967168  ;;  %v792_v0 = vmov 0.0   ;;  %vm793_vm0 = vmmov 0   ;;  %v36_v1 = vld [vmem:[#allocation2] sm:$0xff]  ;;  %v57_v2 = vlaneseq  ;;  %vm99_vm1 = vcmask 261120  }
  0x1a   :  { %649 = vmatprep.subr.mxu0 %v792_v0  ;;  %660 = vmatprep.subr.mxu1 %v792_v0  ;;  %v37_v3 = vunpack.c.0.s8 %v36_v1  ;;  %v38_v4 = vunpack.c.1.s8 %v36_v1  ;;  %v39_v5 = vunpack.c.2.s8 %v36_v1  ;;  %v40_v6 = vunpack.c.3.s8 %v36_v1  ;;  %v98_v20 = vld [vmem:[#allocation5] sm:$0xff]  ;;  %s794_s0 = smov [#allocation7]  }
  0x1b   :  { %657 = vmatprep.mubr.msk.f32.mxu0 %vm793_vm0, %v792_v0  ;;  %668 = vmatprep.mubr.msk.f32.mxu1 %vm793_vm0, %v792_v0  ;;  %v58_v11 = vshrl.u32 %v57_v2, 7  ;;  %v101_v25 = vsel %vm99_vm1, %v98_v20, 0  ;;  %s609_s1 = sshll.u32 %s794_s0, 4  ;;  %s610_s1 = int_to_ptr.vmem [resolvable:$true] %s609_s1 }
  0x1c   :  { %v41_v7 = vcvt.s32.f32 %v37_v3  ;;  %v42_v8 = vcvt.s32.f32 %v38_v4  ;;  %v43_v9 = vcvt.s32.f32 %v39_v5  ;;  %v44_v10 = vcvt.s32.f32 %v40_v6  ;;  %s764_s19 = scalar_lea.vmem %s610_s1, 16  ;;  %s768_s20 = scalar_lea.vmem %s610_s1, 32 }
  0x1d   :  { %vm59_vm2 = vcmp.lt.s32.totalorder %v58_v11, 7  ;;  %vm72_vm3 = vcmp.lt.s32.totalorder %v58_v11, 6  ;;  %v822_v34 = vand.u32 4294901760, %v101_v25  ;;  %vm85_vm4 = vcmp.lt.s32.totalorder %v58_v11, 4  ;;  %p765_p10 = scmp.ne.s32.totalorder %s610_s1, %s764_s19  ;;  %p769_p11 = scmp.lt.s32.totalorder %s610_s1, %s610_s1 }
  0x1e   :  { %v45_v12 = vmul.f32 2.0, %v41_v7  ;;  %v46_v13 = vmul.f32 2.0, %v42_v8  ;;  %v47_v14 = vmul.f32 2.0, %v43_v9  ;;  %v48_v15 = vmul.f32 2.0, %v44_v10  ;;  %p770_p12 = scmp.lt.s32.totalorder %s768_s20, %s764_s19 }
  0x1f   :  { %v825_v47 = vsub.f32 %v101_v25, %v822_v34 }
  0x20   :  { %v49_v16 = vsub.f32 1.0, %v45_v12  ;;  %v50_v17 = vsub.f32 1.0, %v46_v13  ;;  %v51_v18 = vsub.f32 1.0, %v47_v14  ;;  %v52_v19 = vsub.f32 1.0, %v48_v15  ;;  %p771_p13 = por %p770_p12, %p769_p11 }
  0x21   :  { %v174_v60 = vand.u32 4294901760, %v825_v47 }
  0x22   :  { %v53_v21 = vrot.slane %v49_v16, 1  ;;  %v54_v22 = vrot.slane %v50_v17, 1  ;;  %v55_v23 = vrot.slane %v51_v18, 1  ;;  %v56_v24 = vrot.slane %v52_v19, 1  ;;  %p772_p0 = pnand %p771_p13, %p765_p10 }
  0x23   :  { %v175_v6 = vsub.f32 %v825_v47, %v174_v60 }
  0x24   :  { %v60_v26 = vsel %vm59_vm2, %v55_v23, %v56_v24  ;;  %v61_v27 = vsel %vm59_vm2, %v54_v22, %v55_v23  ;;  %v62_v28 = vsel %vm59_vm2, %v53_v21, %v54_v22  ;;  %v63_v29 = vsel %vm59_vm2, %v56_v24, %v53_v21 }
  0x25   :  { %v64_v30 = vmul.f32 %v62_v28, %v49_v16  ;;  %v65_v31 = vmul.f32 %v61_v27, %v50_v17  ;;  %v66_v32 = vmul.f32 %v60_v26, %v51_v18  ;;  %v67_v33 = vmul.f32 %v63_v29, %v52_v19 }
  0x26   :  { %v176_v15 = vand.u32 4294901760, %v175_v6 }
  0x27   :  { %v68_v35 = vrot.slane %v64_v30, 2  ;;  %v69_v36 = vrot.slane %v65_v31, 2  ;;  %v70_v37 = vrot.slane %v66_v32, 2  ;;  %v71_v38 = vrot.slane %v67_v33, 2 }
  0x29   :  { %v74_v39 = vsel %vm72_vm3, %v69_v36, %v70_v37  ;;  %v75_v40 = vsel %vm72_vm3, %v68_v35, %v69_v36  ;;  %v76_v41 = vsel %vm72_vm3, %v71_v38, %v68_v35  ;;  %v73_v42 = vsel %vm72_vm3, %v70_v37, %v71_v38 }
  0x2a   :  { %v77_v43 = vmul.f32 %v75_v40, %v64_v30  ;;  %v78_v44 = vmul.f32 %v74_v39, %v65_v31  ;;  %v80_v45 = vmul.f32 %v76_v41, %v67_v33  ;;  %v79_v46 = vmul.f32 %v73_v42, %v66_v32 }
  0x2c   :  { %v81_v48 = vrot.slane %v77_v43, 4  ;;  %v82_v49 = vrot.slane %v78_v44, 4  ;;  %v84_v50 = vrot.slane %v80_v45, 4  ;;  %v83_v51 = vrot.slane %v79_v46, 4 }
  0x2e   :  { %v88_v52 = vsel %vm85_vm4, %v81_v48, %v82_v49  ;;  %v89_v53 = vsel %vm85_vm4, %v84_v50, %v81_v48  ;;  %v86_v54 = vsel %vm85_vm4, %v83_v51, %v84_v50  ;;  %v87_v55 = vsel %vm85_vm4, %v82_v49, %v83_v51 }
  0x2f   :  { %v90_v56 = vmul.f32 %v88_v52, %v77_v43  ;;  %v93_v57 = vmul.f32 %v89_v53, %v80_v45  ;;  %v92_v58 = vmul.f32 %v86_v54, %v79_v46  ;;  %v91_v59 = vmul.f32 %v87_v55, %v78_v44 }
  0x31   :  { %v97_v61 = vmul.f32 %v93_v57, %v90_v56  ;;  %v96_v62 = vmul.f32 %v93_v57, %v92_v58  ;;  %v95_v63 = vmul.f32 %v92_v58, %v91_v59  ;;  %v94_v1 = vmul.f32 %v91_v59, %v90_v56 }
  0x33   :  { %v828_v2 = vand.u32 4294901760, %v97_v61  ;;  %v830_v3 = vand.u32 4294901760, %v96_v62  ;;  %v832_v4 = vand.u32 4294901760, %v95_v63  ;;  %v834_v5 = vand.u32 4294901760, %v94_v1 }
  0x35   :  { %650 = vmatpush3.msra.mxu0 %v828_v2  ;;  %v208_v7 = vsub.f32 %v97_v61, %v828_v2  ;;  %v215_v8 = vsub.f32 %v96_v62, %v830_v3  ;;  %v222_v9 = vsub.f32 %v95_v63, %v832_v4  ;;  %v229_v10 = vsub.f32 %v94_v1, %v834_v5 }
  0x36   :  { %651 = vmatprep.subr.mxu0 %v792_v0 }
  0x37   :  { %652 = vmatpush3.msra.mxu0 %v830_v3  ;;  %v209_v11 = vand.u32 4294901760, %v208_v7  ;;  %v216_v12 = vand.u32 4294901760, %v215_v8  ;;  %v223_v13 = vand.u32 4294901760, %v222_v9  ;;  %v230_v14 = vand.u32 4294901760, %v229_v10 }
  0x38   :  { %653 = vmatprep.subr.mxu0 %v792_v0 }
  0x39   :  { %654 = vmatpush3.msra.mxu0 %v832_v4  ;;  %v210_v16 = vsub.f32 %v208_v7, %v209_v11  ;;  %v217_v17 = vsub.f32 %v215_v8, %v216_v12  ;;  %v224_v18 = vsub.f32 %v222_v9, %v223_v13  ;;  %v231_v21 = vsub.f32 %v229_v10, %v230_v14 }
  0x3a   :  { %655 = vmatprep.subr.mxu0 %v792_v0 }
  0x3b   :  { %656 = vmatpush3.msra.mxu0 %v834_v5  ;;  %v211_v19 = vand.u32 4294901760, %v210_v16  ;;  %v218_v20 = vand.u32 4294901760, %v217_v17  ;;  %v225_v22 = vand.u32 4294901760, %v224_v18  ;;  %v232_v23 = vand.u32 4294901760, %v231_v21 }
  0x3c   :  { %671 = vmatprep.subr.mxu0 %v792_v0  ;;  %658 = vmatmul.mubr.f32.vlgmr.msra.gmra.mxu0 %v176_v15 }
  0x3d   :  { %661 = vmatpush3.msra.mxu1 %v211_v19  ;;  %672 = vmatpush3.msra.mxu0 %v208_v7 }
  0x3e   :  { %662 = vmatprep.subr.mxu1 %v792_v0  ;;  %673 = vmatprep.subr.mxu0 %v792_v0 }
  0x3f   :  { %663 = vmatpush3.msra.mxu1 %v218_v20  ;;  %674 = vmatpush3.msra.mxu0 %v215_v8 }
  0x40   :  { %664 = vmatprep.subr.mxu1 %v792_v0  ;;  %675 = vmatprep.subr.mxu0 %v792_v0 }
  0x41   :  { %665 = vmatpush3.msra.mxu1 %v225_v22  ;;  %676 = vmatpush3.msra.mxu0 %v222_v9 }
  0x42   :  { %666 = vmatprep.subr.mxu1 %v792_v0  ;;  %677 = vmatprep.subr.mxu0 %v792_v0 }
  0x43   :  { %667 = vmatpush3.msra.mxu1 %v232_v23  ;;  %678 = vmatpush3.msra.mxu0 %v229_v10 }
  0x44   :  { %669 = vmatmul.mubr.f32.vlgmr.msra.gmra.mxu1 %v822_v34  ;;  %682 = vmatprep.subr.mxu1 %v792_v0 }
  0x45   :  { %679 = vmatprep.mubr.msk.f32.mxu0 %vm793_vm0, %v792_v0  ;;  %683 = vmatpush3.msra.mxu1 %v828_v2 }
  0x46   :  { %680 = vmatmul.mubr.f32.vlgmr.msra.gmra.mxu0 %v825_v47  ;;  %684 = vmatprep.subr.mxu1 %v792_v0 }
  0x47   :  { %693 = vmatprep.subr.mxu0 %v792_v0  ;;  %685 = vmatpush3.msra.mxu1 %v830_v3 }
  0x48   :  { %694 = vmatpush3.msra.mxu0 %v209_v11  ;;  %686 = vmatprep.subr.mxu1 %v792_v0 }
  0x49   :  { %695 = vmatprep.subr.mxu0 %v792_v0  ;;  %687 = vmatpush3.msra.mxu1 %v832_v4 }
  0x4a   :  { %696 = vmatpush3.msra.mxu0 %v216_v12  ;;  %688 = vmatprep.subr.mxu1 %v792_v0 }
  0x4b   :  { %697 = vmatprep.subr.mxu0 %v792_v0  ;;  %689 = vmatpush3.msra.mxu1 %v834_v5 }
  0x4c   :  { %690 = vmatprep.mubr.msk.f32.mxu1 %vm793_vm0, %v792_v0  ;;  %698 = vmatpush3.msra.mxu0 %v223_v13 }
  0x4d   :  { %691 = vmatmul.mubr.f32.vlgmr.msra.gmra.mxu1 %v174_v60  ;;  %699 = vmatprep.subr.mxu0 %v792_v0 }
  0x4e   :  { %704 = vmatprep.subr.mxu1 %v792_v0  ;;  %700 = vmatpush3.msra.mxu0 %v230_v14 }
  0x4f   :  { %701 = vmatprep.mubr.msk.f32.mxu0 %vm793_vm0, %v792_v0  ;;  %705 = vmatpush3.msra.mxu1 %v828_v2 }
  0x50   :  { %702 = vmatmul.mubr.f32.vlgmr.msra.gmra.mxu0 %v822_v34  ;;  %706 = vmatprep.subr.mxu1 %v792_v0 }
  0x51   :  { %707 = vmatpush3.msra.mxu1 %v830_v3  ;;  %712 = vmatprep.mubr.msk.f32.mxu1 %vm793_vm0, %v792_v0 }
  0x52   :  { %708 = vmatprep.subr.mxu1 %v792_v0 }
  0x53   :  { %709 = vmatpush3.msra.mxu1 %v832_v4 }
  0x54   :  { %710 = vmatprep.subr.mxu1 %v792_v0 }
  0x55   :  { %711 = vmatpush3.msra.mxu1 %v834_v5 }
  0x56   :  { %713 = vmatmul.mubr.f32.vlgmr.msra.gmra.mxu1 %v822_v34 }
  0xfc   :  { %v178_v24 = vpop.f32.mrf.mxu0 }
  0xfe   :  { %v659_v25 = vpop.f32.mrf.mxu0 }
 0x104   :  { %v269_v26 = vpop.f32.mrf.mxu1 }
 0x105   :  { %v270_v30 = vadd.f32 %v269_v26, %v178_v24 }
 0x106   :  { %v670_v27 = vpop.f32.mrf.mxu1  ;;  %v349_v28 = vpop.f32.mrf.mxu0 }
 0x107   :  { %v350_v32 = vadd.f32 %v349_v28, %v270_v30 }
 0x108   :  { %v681_v29 = vpop.f32.mrf.mxu0 }
 0x10d   :  { %v426_v31 = vpop.f32.mrf.mxu1 }
 0x10e   :  { %v427_v36 = vadd.f32 %v426_v31, %v350_v32 }
 0x10f   :  { %v692_v33 = vpop.f32.mrf.mxu1 }
 0x110   :  { %v509_v35 = vpop.f32.mrf.mxu0 }
 0x111   :  { %v510_v38 = vadd.f32 %v509_v35, %v427_v36 }
 0x112   :  { %v703_v37 = vpop.f32.mrf.mxu0 }
 0x116   :  { %v584_v39 = vpop.f32.mrf.mxu1 }
 0x117   :  { %v585_v0 = vadd.f32 %v584_v39, %v510_v38 }
 0x118   :  { %v714_v40 = vpop.f32.mrf.mxu1 }
 0x119   :  { %v589_v41 = vrot.slane %v585_v0, 1  ;;  %v592_v34 = vrot.slane %v585_v0, 2 }
 0x11b   :  { %v591_v42 = vmul.f32 %v589_v41, %v585_v0 }
 0x11d   :  { %v594_v43 = vmul.f32 %v592_v34, %v591_v42 }
 0x11f   :  { %v595_v44 = vsub.f32 0.0, %v594_v43 }
 0x121   :  { %v596_v45 = vmul.f32 1.442695, %v595_v44 }
 0x123   :  { %720 = vpow2.f32 %v596_v45 }
 0x130   :  { %v721_v46 = vpop.eup %720 }
 0x131   :  { %v598_v47 = vadd.f32 1.0, %v721_v46 }
 0x133   :  { %722 = vrcp.f32 %v598_v47 }
 0x140   :  { %v723_v48 = vpop.eup %722 }
 0x141   :  { %v600_v49 = vmul.f32 2.0, %v723_v48 }
 0x143   :  { %v601_v50 = vsub.f32 1.0, %v600_v49 }
 0x145   :  { %602 = vst [vmem:[#allocation7] sm:$0x1] %v601_v50 }
 0x146   :  { %775 = shalt.err (!%p772_p0)
}
 0x147   :  { %612 = dma.vmem_to_hbm [thread:$0]  %s610_s1, 16, %s896_s2, [#allocation4]  }
 0x148   :  { %788 = dma.done.wait [#allocation4], 16  }
 0x149   :  { %789 = vsyncadd [#allocation4], 4294967280 }
 0x14a   :  { %616 = vsyncpa [#allocation3], 1 }
 0x14b   :  { %617 = vsyncpa [#allocation6], 1 }
 0x14c   :  { %618 = vsyncpa [#allocation4], 1 }

</bundles_post_ra>
